<compile_context>
chip_gen: v5e
topology: v5e:2x2
jax: 0.10.0
libtpu: 0.0.40
codegen_flags: <defaults>
</compile_context>

<pallas_src>
import jax
import jax.numpy as jnp
from jax.experimental import pallas as pl
from jax.experimental.pallas import tpu as pltpu


def _round_up(x: int, m: int) -> int:
    return (x + m - 1) // m * m


def _pixelwise_dot_kernel(x_ref, k_ref, o_ref):
    # x_ref: (c, t)     channels on sublanes, spatial pixels on the 128-lane axis
    # k_ref: (cout, c)  resident across spatial tiles (index_map ignores the spatial index)
    # o_ref: (cout, t)
    o_ref[...] = jnp.dot(
        k_ref[...], x_ref[...], preferred_element_type=jnp.float32
    ).astype(o_ref.dtype)


def pixel_wise_dot_product(x, K, *, t_hw: int | None = None, compute_dtype=None):
    """x: (n, c, h, w), K: (n, cout, c) -> (n, cout, h, w)."""
    n, c, h, w = x.shape
    nk, cout, ck = K.shape
    assert n == nk
    assert c == ck, (
        "Number of channels in x and Embedding dimension (at dim 2) of K "
        "matrix must match"
    )
    hw = h * w
    out_dtype = x.dtype

    # Opt-in reduced-precision compute (numerics-changing); default keeps input dtype.
    if compute_dtype is not None:
        x = x.astype(compute_dtype)
        K = K.astype(compute_dtype)
    itemsize = jnp.dtype(x.dtype).itemsize

    # Per-generation VMEM budget (v5e/v6e: 128 MiB, v7x: 64 MiB). Fall back conservatively.
    try:
        phys_vmem = int(pltpu.get_tpu_info().vmem_capacity_bytes)
    except Exception:
        phys_vmem = 64 << 20
    vmem_cap = (phys_vmem * 3) // 4  # leave headroom for compiler scratch / semaphores

    # Spatial tile: multiple of 128 lanes; bigger tiles on chips with more VMEM;
    # clamp to the (128-rounded) full spatial extent for small inputs.
    if t_hw is None:
        t_hw = 16384 if phys_vmem >= (96 << 20) else 8192
    t = min(t_hw, _round_up(hw, 128))
    t = max(128, _round_up(t, 128))
    num_s_tiles = pl.cdiv(hw, t)  # last tile may be ragged: padded read, masked write

    # Double-buffered tile working set: x tile + out tile + K tile.
    working_set = 2 * (c * t + cout * t + cout * c) * itemsize
    vmem_limit = int(min(max(int(2.5 * working_set), 16 << 20), vmem_cap))

    cost = pl.CostEstimate(
        flops=2 * n * cout * c * hw,
        transcendentals=0,
        bytes_accessed=(n * c * hw + n * cout * c + n * cout * hw) * itemsize,
    )

    # NCHW -> (n, c, h*w) is a free reshape (no copy) for contiguous inputs.
    x_flat = x.reshape(n, c, hw)

    out_flat = pl.pallas_call(
        _pixelwise_dot_kernel,
        out_shape=jax.ShapeDtypeStruct((n, cout, hw), out_dtype),
        grid_spec=pltpu.PrefetchScalarGridSpec(
            num_scalar_prefetch=0,
            grid=(n, num_s_tiles),  # spatial tiles innermost -> K stays resident per batch
            in_specs=[
                # x: (None, c, t) -> kernel sees (c, t); c equals the full array dim
                pl.BlockSpec((None, c, t), lambda b, s: (b, 0, s)),
                # K: block index constant over s -> no re-DMA per spatial tile
                pl.BlockSpec((None, cout, c), lambda b, s: (b, 0, 0)),
            ],
            out_specs=pl.BlockSpec((None, cout, t), lambda b, s: (b, 0, s)),
        ),
        compiler_params=pltpu.CompilerParams(
            dimension_semantics=("parallel", "parallel"),
            vmem_limit_bytes=vmem_limit,
        ),
        cost_estimate=cost,
    )(x_flat, K)

    return out_flat.reshape(n, cout, h, w)


if __name__ == "__main__":
    key = jax.random.PRNGKey(0)
    kx, kk = jax.random.split(key)

    n, c, h, w = 2, 4, 16, 16
    cout = 8

    x = jax.random.normal(kx, (n, c, h, w), dtype=jnp.float32)
    K = jax.random.normal(kk, (n, cout, c), dtype=jnp.float32)

    out = pixel_wise_dot_product(x, K)
    out = jax.block_until_ready(out)

    # Reference check (plain JAX, mirrors the torch.matmul semantics).
    ref = jnp.einsum("nchw,noc->nohw", x, K)
    assert out.shape == (n, cout, h, w)
    assert jnp.allclose(out, ref, atol=1e-5, rtol=1e-5)

    print("KERNEL_OK")
</pallas_src>

<mosaic_0001>
module attributes {stable_mosaic.version = 11 : i64} {
  func.func @_pixelwise_dot_kernel(%arg0: i32, %arg1: i32, %arg2: memref<1x4x256xf32, #tpu.memory_space<vmem>>, %arg3: memref<1x8x4xf32, #tpu.memory_space<vmem>>, %arg4: memref<1x8x256xf32, #tpu.memory_space<vmem>>) attributes {dimension_semantics = [#tpu.dimension_semantics<parallel>, #tpu.dimension_semantics<parallel>], iteration_bounds = array<i64: 2, 1>, scalar_prefetch = 0 : i64, scratch_operands = 0 : i64, tpu.core_type = #tpu.core_type<tc>, window_params = [{transform_indices = @transform_0, window_bounds = array<i64: 1, 4, 256>}, {transform_indices = @transform_1, window_bounds = array<i64: 1, 8, 4>}, {transform_indices = @transform_2, window_bounds = array<i64: 1, 8, 256>}]} {
    %c0 = arith.constant 0 : index
    %c0_0 = arith.constant 0 : index
    %c0_1 = arith.constant 0 : index
    %0 = vector.load %arg3[%c0, %c0_0, %c0_1] : memref<1x8x4xf32, #tpu.memory_space<vmem>>, vector<1x8x4xf32>
    %1 = vector.shape_cast %0 : vector<1x8x4xf32> to vector<8x4xf32>
    %c0_2 = arith.constant 0 : index
    %c0_3 = arith.constant 0 : index
    %c0_4 = arith.constant 0 : index
    %2 = vector.load %arg2[%c0_2, %c0_3, %c0_4] : memref<1x4x256xf32, #tpu.memory_space<vmem>>, vector<1x4x256xf32>
    %3 = vector.shape_cast %2 : vector<1x4x256xf32> to vector<4x256xf32>
    %cst = arith.constant dense<0.000000e+00> : vector<8x256xf32>
    %4 = tpu.matmul %1, %3, %cst {dimension_numbers = #tpu.dot_dimension_numbers<[1], [0], [0], [1], [0, 0, 1, 1], [], []>} : vector<8x4xf32>, vector<4x256xf32>, vector<8x256xf32> -> vector<8x256xf32>
    %c0_5 = arith.constant 0 : index
    %c0_6 = arith.constant 0 : index
    %c0_7 = arith.constant 0 : index
    %5 = vector.load %arg4[%c0_5, %c0_6, %c0_7] : memref<1x8x256xf32, #tpu.memory_space<vmem>>, vector<1x8x256xf32>
    %6 = vector.shape_cast %5 : vector<1x8x256xf32> to vector<8x256xf32>
    %7 = vector.shape_cast %4 : vector<8x256xf32> to vector<1x8x256xf32>
    tpu.vector_store %arg4[%c0_5, %c0_6, %c0_7], %7 {strides = array<i32>} : memref<1x8x256xf32, #tpu.memory_space<vmem>>, vector<1x8x256xf32>,
    return
  }
  func.func @transform_0(%arg0: i32, %arg1: i32) -> (i32, i32, i32) {
    %c0_i32 = arith.constant 0 : i32
    %c0_i32_0 = arith.constant 0 : i32
    return %arg0, %c0_i32, %arg1 : i32, i32, i32
  }
  func.func @transform_1(%arg0: i32, %arg1: i32) -> (i32, i32, i32) {
    %c0_i32 = arith.constant 0 : i32
    %c0_i32_0 = arith.constant 0 : i32
    %c0_i32_1 = arith.constant 0 : i32
    return %arg0, %c0_i32, %c0_i32_0 : i32, i32, i32
  }
  func.func @transform_2(%arg0: i32, %arg1: i32) -> (i32, i32, i32) {
    %c0_i32 = arith.constant 0 : i32
    %c0_i32_0 = arith.constant 0 : i32
    return %arg0, %c0_i32, %arg1 : i32, i32, i32
  }
}

</mosaic_0001>

<bundles_post_ra>
// kernel: tpu_custom_call.1
= control target key start
LH: loop header
LB: loop body
LE: loop exit
PB: predicated region body
PF: predicated region fallthrough
CT: control target
= control target key end

     0   :  { %7 = vsyncpa [#allocation3], 0  ;;  %s624_s0 = inlined_call_operand.vmem [shape: f32[2,4,256], index: 0, kind: input, shape index: {}]   ;;  %s625_s1 = inlined_call_operand.vmem [shape: f32[2,8,4], index: 1, kind: input, shape index: {}]   ;;  %s626_s2 = inlined_call_operand.hbm [shape: f32[2,8,256], index: 2, kind: output, shape index: {}]  }
   0x1   :  { %9 = vsyncpa [#allocation3 + $0x1], 0  ;;  %s524_s9 = smov 0   ;;  %s526_s10 = smov 0  }
   0x2   :  { %s528_s11 = smov 0   ;;  %s530_s12 = smov 0  }
   0x3   :  { %s532_s13 = smov 0   ;;  %s534_s14 = smov 0  }
   0x4 LB: > { %s354_s15 = sadd.s32 4294967295, %s507_s14   ;;  %s355_s16 = sadd.s32 4294967294, %s507_s14   ;;  %s507_s14 = sphi %s534_s14, %s15_s14   ;;  %s503_s13 = sphi %s532_s13, %s633_s13   ;;  %s499_s12 = sphi %s530_s12, %s632_s12   ;;  %s495_s11 = sphi %s528_s11, %s631_s11   ;;  %s491_s10 = sphi %s526_s10, %s630_s10   ;;  %s487_s9 = sphi %s524_s9, %s629_s9  }
   0x5   : > { %s27_s17 = sadd.s32 1, %s503_s13  ;;  %s90_s18 = sadd.s32 1, %s495_s11 }
   0x6   : > { %p29_p0 = scmp.ge.s32.totalorder %s27_s17, 2  ;;  %p100_p1 = scmp.ne.s32.totalorder %s495_s11, %s491_s10 }
   0x7   : > { %p101_p2 = scmp.eq.s32.totalorder %s354_s15, 1  ;;  %p106_p3 = scmp.ne.s32.totalorder %s491_s10, %s487_s9 }
   0x8   : > { %s635_s17 = smov (%p29_p0, %s27_s17), 0  ;;  %p107_p5 = scmp.eq.s32.totalorder %s355_s16, 1 }
   0x9   : > { %p564_p4 = por %p101_p2, %p100_p1  ;;  %s85_s20 = ssub.s32 %s503_s13, %s635_s17 }
   0xa   : > { %p358_p6 = scmp.ge.s32.totalorder %s507_s14, 1  ;;  %p88_p7 = scmp.eq.s32.totalorder %s85_s20, 0 }
   0xb   : > { %p571_p8 = por %p107_p5, %p106_p3  ;;  %p145_p9 = scmp.lt.s32.totalorder %s507_s14, 3 }
   0xc   : > { %s577_s22 = scalar_select %p88_p7, %s495_s11, %s90_s18  }
   0xd   : > { %p146_p10 = pnand %p358_p6, %p145_p9 }
   0xe   : > { %p176_p11 = scmp.lt.s32.totalorder (!%p146_p10), %s499_s12, 1  ;;  %s172_s3 = sand.u32 (!%p146_p10), 1, %s491_s10  }
   0xf   : > { %149 = sbr.rel (%p146_p10) target bundleno = 164 (0xa4), region = 28  ;;  %s359_s4 = sshll.u32 (!%p146_p10), %s172_s3, 4 }
  0x10   : > { %s373_s5 = sshll.u32 (!%p146_p10), %s499_s12, 4  ;;  %s174_s15 = scalar_lea.vmem (!%p146_p10), [#allocation2], %s359_s4 }
  0x11   : > { %s261_s8 = scalar_lea.hbm (!%p146_p10), %s626_s2, %s373_s5  ;;  %s263_s16 = sshll.u32 (!%p146_p10), %s174_s15, 4  ;;  %s264_s16 = int_to_ptr.vmem [resolvable:$true] %s263_s16 }
  0x12   : > { %s265_s18 = sshll.u32 (!%p146_p10), %s261_s8, 4  ;;  %s248_s20 = scalar_lea.sflag (!%p146_p10), [#allocation3], %s172_s3  ;;  %s266_s18 = int_to_ptr.hbm [resolvable:$true] %s265_s18 }
  0x13   : > { %s449_s26 = scalar_lea.hbm (!%p146_p10), %s626_s2, 32 }
  0x14   : > { %s177_s23 = scalar_select %p176_p11, %s499_s12, 1  ;;  %vm200_vm0 = vcmask 1043456   ;;  %vm196_vm1 = vcmask 31744  }
  0x16   : > { %s372_s24 = sshll.u32 %s177_s23, 3  ;;  %s443_s23 = sshra.s32 %s266_s18, 4  ;;  %s444_s23 = int_to_ptr.hbm [resolvable:$true] %s443_s23 }
  0x17   : > { %s183_s27 = scalar_lea.vmem %s624_s0, %s372_s24  ;;  %s188_s30 = scalar_lea.vmem %s625_s1, %s372_s24 }
  0x18   : > { %v191_v0 = vld [vmem:[%s183_s27] sm:$0xff]  ;;  %s445_s24 = scalar_lea.hbm %s444_s23, 16  ;;  %p450_p1 = scmp.lt.s32.totalorder %s444_s23, %s626_s2 }
  0x19   : > { %193 = vst [vmem:[#allocation1] ss:$2 sm:$0xff] %v191_v0  ;;  %v190_v1 = vld [vmem:[%s188_s30] sm:$0xff]  ;;  %p446_p12 = scmp.ne.s32.totalorder %s444_s23, %s445_s24  ;;  %p451_p2 = scmp.lt.s32.totalorder %s449_s26, %s445_s24 }
  0x1b   : > { %p447_p13 = pnand %p446_p12, %p564_p4  ;;  %p452_p3 = por %p451_p2, %p450_p1 }
  0x1d   : > { %p448_p0 = pneg %p447_p13 }
  0x1f   : > { %p453_p5 = pnand %p452_p3, %p448_p0 }
  0x20   : > { %v194_v2 = vld.sshfl [vmem:[#allocation1] sm:$0xff pattern:$0x75316420]  ;;  %v195_v3 = vld.sshfl [vmem:[#allocation1 + $0x8] sm:$0xff pattern:$0x75316420] }
  0x21   : > { %363 = vmatpush.msk.msra.mxu0 %vm200_vm0, %v194_v2  ;;  %365 = vmatpush.msk.msra.mxu1 %vm200_vm0, %v195_v3 }
  0x22   : > { %364 = vmatmul.msk.f32.vlgmr.msra.gmra.mxu0 %vm196_vm1, %v190_v1  ;;  %366 = vmatmul.msk.f32.vlgmr.msra.gmra.mxu1 %vm196_vm1, %v190_v1 }
  0x9f   : > { %v222_v4 = vpop.f32.mrf.mxu0  ;;  %v242_v5 = vpop.f32.mrf.mxu1 }
  0xa0   : > { %245 = vst [vmem:[%s174_s15] sm:$0xff] %v222_v4 }
  0xa1   : > { %246 = vst [vmem:[%s174_s15 + $0x8] sm:$0xff] %v242_v5 }
  0xa2   : > { %456 = shalt.err (!%p453_p5)
}
  0xa3   : > { %374 = dma.vmem_to_hbm [thread:$0]  (%p564_p4), %s264_s16, 256, %s266_s18, %s248_s20  }
  0xa4 PF: > { %p380_p6 = scmp.ge.s32.totalorder %s507_s14, 2  ;;  %s277_s29 = sand.u32 1, %s487_s9  }
  0xa5   : > { %s278_s30 = scalar_lea.sflag [#allocation3], %s277_s29 }
  0xa6   : > { %p377_p7 = pnand %p380_p6, %p571_p8 }
  0xa8   : > { %p378_p9 = pneg %p377_p7 }
  0xaa   : > { %482 = dma.done.wait (%p378_p9), %s278_s30, 256  }
  0xab   : > { %484 = vsyncadd (%p378_p9), %s278_s30, 4294967040  ;;  %s15_s14 = sadd.s32 1, %s507_s14   ;;  %s629_s9 = smov %s491_s10 }
  0xac   : > { %p12_p10 = scmp.ge.s32.totalorder %s15_s14, 4   ;;  %s630_s10 = smov %s495_s11 }
  0xad   : > { %s631_s11 = smov %s577_s22  ;;  %s632_s12 = smov %s503_s13 }
  0xae   : > { %s633_s13 = smov %s635_s17  ;;  %14 = sbr.rel (!%p12_p10) target bundleno = 4 (0x4), region = 66 }
  0xb3   :  { %284 = vsyncpa [#allocation3], 1 }
  0xb4   :  { %286 = vsyncpa [#allocation3 + $0x1], 1 }

</bundles_post_ra>
